<compile_context>
chip_gen: v7x
topology: tpu7x:2x2x1
jax: 0.10.0
libtpu: 0.0.40
codegen_flags: <defaults>
</compile_context>

<pallas_src>
import jax
import jax.numpy as jnp
from jax.experimental import pallas as pl
from jax.experimental.pallas import tpu as pltpu


def _round_up(n, m):
    return ((n + m - 1) // m) * m


def simclr_kernel(x_ref, we_ref, be_ref, w1_ref, b1_ref, w2_ref, b2_ref,
                  h_ref, z_ref):
    # ---- encoder Linear: (TB, Kp) bf16 @ (Kp, emb) bf16, f32 accumulation ----
    h = jnp.dot(x_ref[...], we_ref[...],
                preferred_element_type=jnp.float32) + be_ref[...]
    h_ref[...] = h.astype(h_ref.dtype)

    # ---- projection head: Linear -> ReLU -> Linear (bf16 into MXU, f32 acc) ----
    a = jnp.dot(h.astype(w1_ref.dtype), w1_ref[...],
                preferred_element_type=jnp.float32) + b1_ref[...]
    a = jnp.maximum(a, 0.0)
    z = jnp.dot(a.astype(w2_ref.dtype), w2_ref[...],
                preferred_element_type=jnp.float32) + b2_ref[...]

    # ---- F.normalize(z, dim=1): rsqrt lands on the EUP (own VLIW slot) ----
    sumsq = jnp.sum(z * z, axis=1, keepdims=True)
    z_ref[...] = (z * jax.lax.rsqrt(jnp.maximum(sumsq, 1e-24))).astype(z_ref.dtype)


def simclr1d_forward(x, params, *, tb=128):
    """x: (B, C, L) float32.  Returns (h, z) of shapes (B, emb_dim), (B, proj_dim)."""
    we, be, w1, b1, w2, b2 = (params[k] for k in
                              ("we", "be", "w1", "b1", "w2", "b2"))
    B, C, L = x.shape
    K = C * L
    emb_dim = we.shape[1]
    hid_dim = w1.shape[1]
    proj_dim = w2.shape[1]

    # --- host-side glue: flatten, pad K to lane width, pad/tile the batch ---
    Kp = _round_up(K, 128)           # full-width MXU contraction, unmasked vld
    TB = min(tb, _round_up(B, 8))    # batch tile (>=8 sublanes); 128 fits all chips
    Bp = _round_up(B, TB)

    x_flat = x.reshape(B, K)
    x_flat = jnp.pad(x_flat, ((0, Bp - B), (0, Kp - K))).astype(jnp.bfloat16)
    we_p = jnp.pad(we, ((0, Kp - K), (0, 0))).astype(jnp.bfloat16)
    w1_b = w1.astype(jnp.bfloat16)
    w2_b = w2.astype(jnp.bfloat16)

    grid = (Bp // TB,)

    flops = 2 * Bp * (Kp * emb_dim + emb_dim * hid_dim + hid_dim * proj_dim)
    bytes_accessed = (x_flat.size * 2 + we_p.size * 2 + w1_b.size * 2 +
                      w2_b.size * 2 + (be.size + b1.size + b2.size) * 4 +
                      Bp * (emb_dim + proj_dim) * 4)

    const = lambda shp: pl.BlockSpec(shp, lambda i: (0,) * len(shp))
    row_tile = lambda d: pl.BlockSpec((TB, d), lambda i: (i, 0))

    h, z = pl.pallas_call(
        simclr_kernel,
        out_shape=(
            jax.ShapeDtypeStruct((Bp, emb_dim), jnp.float32),
            jax.ShapeDtypeStruct((Bp, proj_dim), jnp.float32),
        ),
        grid_spec=pltpu.PrefetchScalarGridSpec(
            num_scalar_prefetch=0,
            grid=grid,
            in_specs=[
                row_tile(Kp),                         # x tile streams per step
                const(we_p.shape), const(be.shape),   # weights stay VMEM-resident
                const(w1_b.shape), const(b1.shape),
                const(w2_b.shape), const(b2.shape),
            ],
            out_specs=[row_tile(emb_dim), row_tile(proj_dim)],
        ),
        compiler_params=pltpu.CompilerParams(
            dimension_semantics=("parallel",),        # batch tiles shard across TCs on v7x
            vmem_limit_bytes=32 * 1024 * 1024,
        ),
        cost_estimate=pl.CostEstimate(
            flops=flops, transcendentals=Bp, bytes_accessed=bytes_accessed),
    )(x_flat, we_p, be, w1_b, b1, w2_b, b2)

    return h[:B], z[:B]


def init_params(key, in_features, emb_dim=128, proj_dim=128):
    """Deterministic init mimicking PyTorch Linear's U(-1/sqrt(fan_in), 1/sqrt(fan_in))."""
    ks = jax.random.split(key, 6)

    def lin(kw, kb, fan_in, fan_out):
        bound = 1.0 / jnp.sqrt(jnp.float32(fan_in))
        w = jax.random.uniform(kw, (fan_in, fan_out), jnp.float32, -bound, bound)
        b = jax.random.uniform(kb, (1, fan_out), jnp.float32, -bound, bound)
        return w, b

    we, be = lin(ks[0], ks[1], in_features, emb_dim)        # encoder Linear
    w1, b1 = lin(ks[2], ks[3], emb_dim, emb_dim * 2)        # proj Linear 1
    w2, b2 = lin(ks[4], ks[5], emb_dim * 2, proj_dim)       # proj Linear 2
    return dict(we=we, be=be, w1=w1, b1=b1, w2=w2, b2=b2)


def reference_forward_bf16(x, params):
    """Mirrors the kernel's numerics (bf16 MXU inputs, f32 accumulation)."""
    B, C, L = x.shape
    bf = jnp.bfloat16
    xf = x.reshape(B, C * L)
    h = jnp.dot(xf.astype(bf), params["we"].astype(bf),
                preferred_element_type=jnp.float32) + params["be"]
    a = jnp.maximum(jnp.dot(h.astype(bf), params["w1"].astype(bf),
                            preferred_element_type=jnp.float32) + params["b1"], 0.0)
    z = jnp.dot(a.astype(bf), params["w2"].astype(bf),
                preferred_element_type=jnp.float32) + params["b2"]
    n2 = jnp.sum(z * z, axis=1, keepdims=True)
    return h, z * jax.lax.rsqrt(jnp.maximum(n2, 1e-24))


def reference_forward_f32(x, params):
    """Exact f32 semantics of the PyTorch module (flatten-Linear encoder)."""
    B, C, L = x.shape
    xf = x.reshape(B, C * L)
    h = xf @ params["we"] + params["be"]
    a = jnp.maximum(h @ params["w1"] + params["b1"], 0.0)
    z = a @ params["w2"] + params["b2"]
    n = jnp.sqrt(jnp.sum(z * z, axis=1, keepdims=True))
    return h, z / jnp.maximum(n, 1e-12)


if __name__ == "__main__":
    key = jax.random.PRNGKey(0)
    kx, kp = jax.random.split(key)

    # Small 1D-signal batch (NCL layout); B=192 exercises batch padding + 2 grid tiles.
    B, C, L = 192, 4, 16
    emb_dim, proj_dim = 128, 128

    x = jax.random.normal(kx, (B, C, L), dtype=jnp.float32)
    params = init_params(kp, C * L, emb_dim, proj_dim)

    h, z = simclr1d_forward(x, params)
    jax.block_until_ready((h, z))

    assert h.shape == (B, emb_dim) and z.shape == (B, proj_dim)

    # Tight check vs a reference with matching (bf16-in, f32-accumulate) numerics.
    h_ref, z_ref = reference_forward_bf16(x, params)
    assert jnp.allclose(h, h_ref, atol=1e-3, rtol=1e-3)
    assert jnp.allclose(z, z_ref, atol=1e-3, rtol=1e-3)

    # Loose semantic check vs the exact f32 forward of the PyTorch module.
    h_f32, z_f32 = reference_forward_f32(x, params)
    assert jnp.allclose(h, h_f32, atol=3e-2, rtol=3e-2)
    assert jnp.allclose(z, z_f32, atol=3e-2, rtol=3e-2)

    # z rows are unit-norm as F.normalize guarantees.
    assert jnp.allclose(jnp.linalg.norm(z, axis=1), 1.0, atol=1e-3)

    print("KERNEL_OK")
</pallas_src>

<mosaic_0001>
module attributes {stable_mosaic.version = 11 : i64} {
  func.func @simclr_kernel(%arg0: i32, %arg1: memref<128x128xbf16, #tpu.memory_space<vmem>>, %arg2: memref<128x128xbf16, #tpu.memory_space<vmem>>, %arg3: memref<1x128xf32, #tpu.memory_space<vmem>>, %arg4: memref<128x256xbf16, #tpu.memory_space<vmem>>, %arg5: memref<1x256xf32, #tpu.memory_space<vmem>>, %arg6: memref<256x128xbf16, #tpu.memory_space<vmem>>, %arg7: memref<1x128xf32, #tpu.memory_space<vmem>>, %arg8: memref<128x128xf32, #tpu.memory_space<vmem>>, %arg9: memref<128x128xf32, #tpu.memory_space<vmem>>) attributes {dimension_semantics = [#tpu.dimension_semantics<parallel>], iteration_bounds = array<i64: 2>, scalar_prefetch = 0 : i64, scratch_operands = 0 : i64, tpu.core_type = #tpu.core_type<tc>, window_params = [{transform_indices = @transform_0, window_bounds = array<i64: 128, 128>}, {pipeline_mode = #tpu.pipeline_mode<synchronous>, transform_indices = @transform_1, window_bounds = array<i64: 128, 128>}, {pipeline_mode = #tpu.pipeline_mode<synchronous>, transform_indices = @transform_2, window_bounds = array<i64: 1, 128>}, {pipeline_mode = #tpu.pipeline_mode<synchronous>, transform_indices = @transform_3, window_bounds = array<i64: 128, 256>}, {pipeline_mode = #tpu.pipeline_mode<synchronous>, transform_indices = @transform_4, window_bounds = array<i64: 1, 256>}, {pipeline_mode = #tpu.pipeline_mode<synchronous>, transform_indices = @transform_5, window_bounds = array<i64: 256, 128>}, {pipeline_mode = #tpu.pipeline_mode<synchronous>, transform_indices = @transform_6, window_bounds = array<i64: 1, 128>}, {transform_indices = @transform_7, window_bounds = array<i64: 128, 128>}, {transform_indices = @transform_8, window_bounds = array<i64: 128, 128>}]} {
    %c0 = arith.constant 0 : index
    %c0_0 = arith.constant 0 : index
    %0 = vector.load %arg1[%c0, %c0_0] : memref<128x128xbf16, #tpu.memory_space<vmem>>, vector<128x128xbf16>
    %c0_1 = arith.constant 0 : index
    %c0_2 = arith.constant 0 : index
    %1 = vector.load %arg2[%c0_1, %c0_2] : memref<128x128xbf16, #tpu.memory_space<vmem>>, vector<128x128xbf16>
    %cst = arith.constant dense<0.000000e+00> : vector<128x128xf32>
    %2 = tpu.matmul %0, %1, %cst {dimension_numbers = #tpu.dot_dimension_numbers<[1], [0], [0], [1], [0, 0, 1, 1], [], []>} : vector<128x128xbf16>, vector<128x128xbf16>, vector<128x128xf32> -> vector<128x128xf32>
    %c0_3 = arith.constant 0 : index
    %c0_4 = arith.constant 0 : index
    %3 = vector.load %arg3[%c0_3, %c0_4] : memref<1x128xf32, #tpu.memory_space<vmem>>, vector<1x128xf32>
    %4 = vector.broadcast %3 : vector<1x128xf32> to vector<128x128xf32>
    %5 = arith.addf %2, %4 : vector<128x128xf32>
    %c0_5 = arith.constant 0 : index
    %c0_6 = arith.constant 0 : index
    %6 = vector.load %arg8[%c0_5, %c0_6] : memref<128x128xf32, #tpu.memory_space<vmem>>, vector<128x128xf32>
    tpu.vector_store %arg8[%c0_5, %c0_6], %5 {strides = array<i32>} : memref<128x128xf32, #tpu.memory_space<vmem>>, vector<128x128xf32>,
    %7 = arith.truncf %5 : vector<128x128xf32> to vector<128x128xbf16>
    %c0_7 = arith.constant 0 : index
    %c0_8 = arith.constant 0 : index
    %8 = vector.load %arg4[%c0_7, %c0_8] : memref<128x256xbf16, #tpu.memory_space<vmem>>, vector<128x256xbf16>
    %cst_9 = arith.constant dense<0.000000e+00> : vector<128x256xf32>
    %9 = tpu.matmul %7, %8, %cst_9 {dimension_numbers = #tpu.dot_dimension_numbers<[1], [0], [0], [1], [0, 0, 1, 1], [], []>} : vector<128x128xbf16>, vector<128x256xbf16>, vector<128x256xf32> -> vector<128x256xf32>
    %c0_10 = arith.constant 0 : index
    %c0_11 = arith.constant 0 : index
    %10 = vector.load %arg5[%c0_10, %c0_11] : memref<1x256xf32, #tpu.memory_space<vmem>>, vector<1x256xf32>
    %11 = vector.broadcast %10 : vector<1x256xf32> to vector<128x256xf32>
    %12 = arith.addf %9, %11 : vector<128x256xf32>
    %cst_12 = arith.constant 0.000000e+00 : f32
    %13 = vector.broadcast %cst_12 : f32 to vector<128x256xf32>
    %14 = arith.maximumf %12, %13 : vector<128x256xf32>
    %15 = arith.truncf %14 : vector<128x256xf32> to vector<128x256xbf16>
    %c0_13 = arith.constant 0 : index
    %c0_14 = arith.constant 0 : index
    %16 = vector.load %arg6[%c0_13, %c0_14] : memref<256x128xbf16, #tpu.memory_space<vmem>>, vector<256x128xbf16>
    %cst_15 = arith.constant dense<0.000000e+00> : vector<128x128xf32>
    %17 = tpu.matmul %15, %16, %cst_15 {dimension_numbers = #tpu.dot_dimension_numbers<[1], [0], [0], [1], [0, 0, 1, 1], [], []>} : vector<128x256xbf16>, vector<256x128xbf16>, vector<128x128xf32> -> vector<128x128xf32>
    %c0_16 = arith.constant 0 : index
    %c0_17 = arith.constant 0 : index
    %18 = vector.load %arg7[%c0_16, %c0_17] : memref<1x128xf32, #tpu.memory_space<vmem>>, vector<1x128xf32>
    %19 = vector.broadcast %18 : vector<1x128xf32> to vector<128x128xf32>
    %20 = arith.addf %17, %19 : vector<128x128xf32>
    %21 = arith.mulf %20, %20 : vector<128x128xf32>
    %cst_18 = arith.constant dense<0.000000e+00> : vector<128xf32>
    %22 = vector.multi_reduction <add>, %21, %cst_18 [1] : vector<128x128xf32> to vector<128xf32>
    %23 = vector.shape_cast %22 : vector<128xf32> to vector<128x1xf32>
    %cst_19 = arith.constant 1.000000e-24 : f32
    %24 = vector.broadcast %cst_19 : f32 to vector<128x1xf32>
    %25 = arith.maximumf %23, %24 : vector<128x1xf32>
    %26 = math.rsqrt %25 : vector<128x1xf32>
    %27 = vector.broadcast %26 : vector<128x1xf32> to vector<128x128xf32>
    %28 = arith.mulf %20, %27 : vector<128x128xf32>
    %c0_20 = arith.constant 0 : index
    %c0_21 = arith.constant 0 : index
    %29 = vector.load %arg9[%c0_20, %c0_21] : memref<128x128xf32, #tpu.memory_space<vmem>>, vector<128x128xf32>
    tpu.vector_store %arg9[%c0_20, %c0_21], %28 {strides = array<i32>} : memref<128x128xf32, #tpu.memory_space<vmem>>, vector<128x128xf32>,
    return
  }
  func.func @transform_0(%arg0: i32) -> (i32, i32) {
    %c0_i32 = arith.constant 0 : i32
    %c0_i32_0 = arith.constant 0 : i32
    return %arg0, %c0_i32 : i32, i32
  }
  func.func @transform_1(%arg0: i32) -> (i32, i32) {
    %c0_i32 = arith.constant 0 : i32
    %c0_i32_0 = arith.constant 0 : i32
    %c0_i32_1 = arith.constant 0 : i32
    return %c0_i32, %c0_i32_0 : i32, i32
  }
  func.func @transform_2(%arg0: i32) -> (i32, i32) {
    %c0_i32 = arith.constant 0 : i32
    %c0_i32_0 = arith.constant 0 : i32
    %c0_i32_1 = arith.constant 0 : i32
    return %c0_i32, %c0_i32_0 : i32, i32
  }
  func.func @transform_3(%arg0: i32) -> (i32, i32) {
    %c0_i32 = arith.constant 0 : i32
    %c0_i32_0 = arith.constant 0 : i32
    %c0_i32_1 = arith.constant 0 : i32
    return %c0_i32, %c0_i32_0 : i32, i32
  }
  func.func @transform_4(%arg0: i32) -> (i32, i32) {
    %c0_i32 = arith.constant 0 : i32
    %c0_i32_0 = arith.constant 0 : i32
    %c0_i32_1 = arith.constant 0 : i32
    return %c0_i32, %c0_i32_0 : i32, i32
  }
  func.func @transform_5(%arg0: i32) -> (i32, i32) {
    %c0_i32 = arith.constant 0 : i32
    %c0_i32_0 = arith.constant 0 : i32
    %c0_i32_1 = arith.constant 0 : i32
    return %c0_i32, %c0_i32_0 : i32, i32
  }
  func.func @transform_6(%arg0: i32) -> (i32, i32) {
    %c0_i32 = arith.constant 0 : i32
    %c0_i32_0 = arith.constant 0 : i32
    %c0_i32_1 = arith.constant 0 : i32
    return %c0_i32, %c0_i32_0 : i32, i32
  }
  func.func @transform_7(%arg0: i32) -> (i32, i32) {
    %c0_i32 = arith.constant 0 : i32
    %c0_i32_0 = arith.constant 0 : i32
    return %arg0, %c0_i32 : i32, i32
  }
  func.func @transform_8(%arg0: i32) -> (i32, i32) {
    %c0_i32 = arith.constant 0 : i32
    %c0_i32_0 = arith.constant 0 : i32
    return %arg0, %c0_i32 : i32, i32
  }
}

</mosaic_0001>

<bundles_post_ra>
// kernel: tpu_custom_call.1
= control target key start
LH: loop header
LB: loop body
LE: loop exit
PB: predicated region body
PF: predicated region fallthrough
CT: control target
= control target key end

     0   :  { %s2623_s0 = inlined_call_operand.hbm [shape: bf16[256,128], index: 0, kind: input, shape index: {}]   ;;  %s2624_s1 = inlined_call_operand.hbm [shape: bf16[128,128], index: 1, kind: input, shape index: {}]   ;;  %s2625_s2 = inlined_call_operand.vmem [shape: f32[1,128], index: 2, kind: input, shape index: {}]   ;;  %s2626_s3 = inlined_call_operand.hbm [shape: bf16[128,256], index: 3, kind: input, shape index: {}]   ;;  %s2627_s4 = inlined_call_operand.vmem [shape: f32[1,256], index: 4, kind: input, shape index: {}]   ;;  %s2628_s5 = inlined_call_operand.hbm [shape: bf16[256,128], index: 5, kind: input, shape index: {}]   ;;  %s2629_s6 = inlined_call_operand.vmem [shape: f32[1,128], index: 6, kind: input, shape index: {}]   ;;  %s2630_s7 = inlined_call_operand.hbm [shape: f32[256,128], index: 7, kind: output, shape index: {0}]   ;;  %s2631_s8 = inlined_call_operand.hbm [shape: f32[256,128], index: 8, kind: output, shape index: {1}]  }
   0x1   :  { %2641 = sst [smem:[#allocation20_spill]] %s2624_s1 }
   0x2   :  { %14 = vsyncpa [#allocation3], 0 }
   0x3   :  { %16 = vsyncpa [#allocation3 + $0x1], 0 }
   0x4   :  { %17 = vsyncpa [#allocation6], 0 }
   0x5   :  { %18 = vsyncpa [#allocation9], 0 }
   0x6   :  { %19 = vsyncpa [#allocation4], 0 }
   0x7   :  { %21 = vsyncpa [#allocation4 + $0x1], 0 }
   0x8   :  { %22 = vsyncpa [#allocation12], 0 }
   0x9   :  { %24 = vsyncpa [#allocation12 + $0x1], 0  ;;  %s2083_s27 = smov 0   ;;  %s2085_s28 = smov 0  }
   0xa   :  { %s2087_s29 = smov 0   ;;  %s2089_s30 = smov 0  }
   0xb LB: > { %2642 = sst [smem:[#allocation18_spill]] %s2011_s27  ;;  %s2104_s9 = sadd.s32 4294967295, %s2023_s30   ;;  %s2023_s30 = sphi %s2089_s30, %s2668_s30   ;;  %s2019_s29 = sphi %s2087_s29, %s2667_s29   ;;  %s2015_s28 = sphi %s2085_s28, %s2666_s28   ;;  %s2011_s27 = sphi %s2083_s27, %s2665_s27  }
   0xc   : > { %s1421_s10 = sadd.s32 4294967294, %s2023_s30   ;;  %p50_p0 = scmp.ne.s32.totalorder %s2015_s28, %s2011_s27 }
   0xd   : > { %p2632_p1 = scmp.eq.s32.totalorder %s2104_s9, 0  ;;  %p206_p3 = scmp.eq.s32.totalorder %s1421_s10, 1 }
   0xe   : > { %p1422_p5 = scmp.ge.s32.totalorder %s2023_s30, 1  ;;  %p239_p7 = scmp.lt.s32.totalorder %s2023_s30, 3 }
   0xf   : > { %p2113_p4 = por %p2632_p1, %p50_p0  ;;  %p2118_p6 = por %p206_p3, %p50_p0 }
  0x10   : > { %p2123_p8 = pnand %p1422_p5, %p239_p7  ;;  %s2025_s14 = smov [#allocation5]  }
  0x11   : > { %s2643_s11 = scalar_select %p2113_p4, 1, 0 }
  0x12   : > { %s2644_s12 = scalar_select %p2118_p6, 1, 0 }
  0x13   : > { %s2646_s13 = scalar_select %p2123_p8, 1, 0 }
  0x14   : > { %2645 = sst [smem:[#allocation19_spill]] %s2644_s12  ;;  %s251_s15 = sshll.u32 %s2025_s14, 4  ;;  %s2127_s15 = int_to_ptr.vmem [resolvable:$true] %s251_s15 }
  0x15   : > { %p1644_p9 = pneg %p2123_p8  ;;  %s2026_s17 = smov [#allocation7]  }
  0x16   : > { %s267_s18 = sshll.u32 %s2026_s17, 4  ;;  %s2648_s1 = sld [smem:[#allocation20_spill]]  ;;  %s2138_s18 = int_to_ptr.vmem [resolvable:$true] %s267_s18 }
  0x17   : > { %p2134_p11 = pnand %p1644_p9, %p2632_p1 }
  0x19   : > { %p2148_p13 = pneg %p2134_p11 }
  0x1c   : > { %s1803_s21 = scalar_lea.hbm %s2648_s1, 1024 }
  0x1d   : > { %p1804_p12 = scmp.ne.s32.totalorder %s2648_s1, %s1803_s21  ;;  %p1810_p5 = scmp.lt.u32.totalorder %s1803_s21, %s2648_s1 }
  0x1f   : > { %p1806_p0 = pnand %p2148_p13, %p1804_p12 }
  0x21   : > { %p1807_p3 = pneg %p1806_p0 }
  0x23   : > { %p1812_p7 = pnand %p1810_p5, %p1807_p3 }
  0x25   : > { %1815 = shalt.err (!%p1812_p7)
}
  0x26   : > { %s1816_s10 = scalar_lea.vmem %s2127_s15, 1024  ;;  %p1824_p2 = scmp.lt.s32.totalorder %s2127_s15, %s2127_s15 }
  0x27   : > { %p1817_p9 = scmp.ne.s32.totalorder %s2127_s15, %s1816_s10  ;;  %p1825_p6 = scmp.lt.s32.totalorder %s1816_s10, %s1816_s10 }
  0x29   : > { %p1819_p10 = pnand %p1817_p9, %p2148_p13  ;;  %p1826_p12 = por %p1825_p6, %p1824_p2 }
  0x2b   : > { %p1820_p1 = pneg %p1819_p10 }
  0x2d   : > { %p1827_p0 = pnand %p1826_p12, %p1820_p1 }
  0x2f   : > { %1830 = shalt.err (!%p1827_p0)
}
  0x30   : > { %s2634_s14 = smov 64   ;;  %s2636_s17 = smov 4  }
  0x31   : > { %1647 = dma.hbm_to_vmem [thread:$0]  (!%p2134_p11), %s2648_s1, 1024, %s2127_s15, [#allocation6], %s2634_s14, %s2634_s14, %s2636_s17  }
  0x32   : > { %s1831_s23 = scalar_lea.hbm %s2626_s3, 2048 }
  0x33   : > { %p1832_p1 = scmp.ne.s32.totalorder %s2626_s3, %s1831_s23  ;;  %p1838_p10 = scmp.lt.u32.totalorder %s1831_s23, %s2626_s3 }
  0x35   : > { %p1834_p2 = pnand %p1832_p1, %p2148_p13 }
  0x37   : > { %p1835_p6 = pneg %p1834_p2 }
  0x39   : > { %p1840_p3 = pnand %p1838_p10, %p1835_p6 }
  0x3b   : > { %1843 = shalt.err (!%p1840_p3)
}
  0x3c   : > { %s1844_s15 = scalar_lea.vmem %s2138_s18, 2048  ;;  %p1852_p12 = scmp.lt.s32.totalorder %s2138_s18, %s2138_s18 }
  0x3d   : > { %p1845_p5 = scmp.ne.s32.totalorder %s2138_s18, %s1844_s15  ;;  %p1853_p0 = scmp.lt.s32.totalorder %s1844_s15, %s1844_s15 }
  0x3f   : > { %p1847_p7 = pnand %p1845_p5, %p2148_p13  ;;  %p1854_p1 = por %p1853_p0, %p1852_p12 }
  0x41   : > { %p1848_p9 = pneg %p1847_p7 }
  0x43   : > { %p1855_p2 = pnand %p1854_p1, %p1848_p9 }
  0x45   : > { %1858 = shalt.err (!%p1855_p2)
}
  0x46   : > { %s2029_s19 = smov 128   ;;  %s2030_s12 = smov 8  }
  0x47   : > { %1650 = dma.hbm_to_vmem [thread:$0]  (!%p2134_p11), %s2626_s3, 2048, %s2138_s18, [#allocation6], %s2029_s19, %s2029_s19, %s2030_s12  }
  0x48   : > { %s2031_s22 = smov [#allocation8]   ;;  %s2196_s25 = sadd.s32 1, %s2023_s30  }
  0x49   : > { %s283_s23 = sshll.u32 %s2031_s22, 4  ;;  %s1859_s15 = scalar_lea.hbm %s2628_s5, 2048  ;;  %s284_s23 = int_to_ptr.vmem [resolvable:$true] %s283_s23 }
  0x4a   : > { %p1860_p6 = scmp.ne.s32.totalorder %s2628_s5, %s1859_s15  ;;  %p1866_p5 = scmp.lt.u32.totalorder %s1859_s15, %s2628_s5 }
  0x4c   : > { %p1862_p10 = pnand %p1860_p6, %p2148_p13 }
  0x4e   : > { %p1863_p3 = pneg %p1862_p10 }
  0x50   : > { %p1868_p7 = pnand %p1866_p5, %p1863_p3 }
  0x52   : > { %1871 = shalt.err (!%p1868_p7)
}
  0x53   : > { %s1872_s18 = scalar_lea.vmem %s284_s23, 2048  ;;  %p1880_p1 = scmp.lt.s32.totalorder %s284_s23, %s284_s23 }
  0x54   : > { %p1873_p9 = scmp.ne.s32.totalorder %s284_s23, %s1872_s18  ;;  %p1881_p2 = scmp.lt.s32.totalorder %s1872_s18, %s1872_s18 }
  0x56   : > { %p1875_p12 = pnand %p1873_p9, %p2148_p13  ;;  %p1882_p4 = por %p1881_p2, %p1880_p1 }
  0x58   : > { %p1876_p0 = pneg %p1875_p12 }
  0x5a   : > { %p1883_p8 = pnand %p1882_p4, %p1876_p0 }
  0x5c   : > { %1886 = shalt.err (!%p1883_p8)
}
  0x5d   : > { %s2650_s14 = smov 4   ;;  %s2651_s17 = smov 64  }
  0x5e   : > { %1653 = dma.hbm_to_vmem [thread:$0]  (!%p2134_p11), %s2628_s5, 2048, %s284_s23, [#allocation9], %s2651_s17, %s2651_s17, %s2650_s14  }
  0x5f   : > { %s34_s24 = ssub.s32 %s2023_s30, %s2196_s25  ;;  %s37_s16 = sadd.s32 1, %s2019_s29 }
  0x60   : > { %p35_p4 = scmp.eq.s32.totalorder %s34_s24, 0  ;;  %p44_p8 = scmp.ne.s32.totalorder %s2019_s29, %s2015_s28 }
  0x61   : > { %p45_p13 = scmp.eq.s32.totalorder %s2023_s30, 0  ;;  %p1668_p6 = scmp.lt.s32.totalorder %s2023_s30, 2 }
  0x62   : > { %s2227_s19 = scalar_select %p35_p4, %s2019_s29, %s37_s16  }
  0x63   : > { %p46_p10 = por %p45_p13, %p44_p8  ;;  %p2652_p3 = scmp.eq.s32.totalorder %s2104_s9, 1 }
  0x64   : > { %s300_s20 = sand.u32 1, %s2019_s29   ;;  %s1495_s21 = sshll.u32 %s2023_s30, 10 }
  0x65   : > { %p2231_p5 = por %p2652_p3, %p44_p8  ;;  %s1427_s22 = sshll.u32 %s300_s20, 6 }
  0x66   : > { %s2240_s23 = scalar_lea.hbm %s2623_s0, %s1495_s21  ;;  %s304_s15 = scalar_lea.vmem [#allocation2], %s1427_s22 }
  0x67   : > { %s311_s18 = sshll.u32 %s304_s15, 4  ;;  %p2242_p11 = pnand %p1668_p6, %p46_p10  ;;  %s2246_s18 = int_to_ptr.vmem [resolvable:$true] %s311_s18 }
  0x68   : > { %s2248_s27 = scalar_lea.sflag [#allocation3], %s300_s20  ;;  %s1887_s24 = scalar_lea.hbm %s2240_s23, 1024 }
  0x69   : > { %p1888_p7 = scmp.ne.s32.totalorder %s2240_s23, %s1887_s24  ;;  %p1889_p9 = pneg %p2242_p11 }
  0x6a   : > { %s1892_s22 = scalar_lea.hbm %s2623_s0, 2048  ;;  %p1893_p1 = scmp.lt.u32.totalorder %s2240_s23, %s2623_s0 }
  0x6b   : > { %p1890_p12 = pnand %p1889_p9, %p1888_p7  ;;  %p1894_p2 = scmp.lt.u32.totalorder %s1892_s22, %s1887_s24 }
  0x6c   : > { %p1896_p8 = scmp.lt.u32.totalorder %s1887_s24, %s2240_s23 }
  0x6d   : > { %p1891_p0 = pneg %p1890_p12  ;;  %p1895_p4 = por %p1894_p2, %p1893_p1 }
  0x6f   : > { %p1897_p13 = por %p1896_p8, %p1895_p4 }
  0x71   : > { %p1898_p6 = pnand %p1897_p13, %p1891_p0 }
  0x73   : > { %1901 = shalt.err (!%p1898_p6)
}
  0x74   : > { %s1902_s20 = scalar_lea.vmem %s2246_s18, 1024  ;;  %s2032_s15 = smov [#allocation2]  }
  0x75   : > { %p1903_p10 = scmp.ne.s32.totalorder %s2246_s18, %s1902_s20  ;;  %s1907_s16 = sshll.u32 %s2032_s15, 4  ;;  %s1908_s16 = int_to_ptr.vmem [resolvable:$false] %s1907_s16 }
  0x76   : > { %s1909_s21 = scalar_lea.vmem %s1908_s16, 2048  ;;  %p1910_p12 = scmp.lt.s32.totalorder %s2246_s18, %s1908_s16 }
  0x77   : > { %p1905_p3 = pnand %p1903_p10, %p1889_p9  ;;  %p1911_p1 = scmp.lt.s32.totalorder %s1909_s21, %s1902_s20 }
  0x79   : > { %p1906_p7 = pneg %p1905_p3  ;;  %p1912_p2 = por %p1911_p1, %p1910_p12 }
  0x7b   : > { %p1913_p4 = pnand %p1912_p2, %p1906_p7 }
  0x7d   : > { %1916 = shalt.err (!%p1913_p4)
}
  0x7e   : > { %1657 = dma.hbm_to_vmem [thread:$0]  (!%p2242_p11), %s2240_s23, 1024, %s2246_s18, %s2248_s27, %s2651_s17, %s2651_s17, %s2650_s14  }
  0x7f   : > { %p2655_p9 = scmp.ne.s32.totalorder %s2646_s13, 0 }
  0x80   : > { %s2282_s24 = sand.u32 (!%p2655_p9), 1, %s2015_s28   ;;  %p2656_p0 = scmp.ne.s32.totalorder (!%p2655_p9), %s2643_s11, 0 }
  0x81   : > { %323 = sbr.rel (%p2655_p9) target bundleno = 1066 (0x42a), region = 48  ;;  %s1431_s22 = sshll.u32 (!%p2655_p9), %s2282_s24, 6 }
  0x82   : > { %s326_s26 = scalar_lea.sflag (!%p2655_p9), [#allocation3], %s2282_s24  ;;  %s2286_s10 = scalar_lea.vmem (!%p2655_p9), [#allocation2], %s1431_s22 }
  0x88   : > { %1990 = dma.done.wait (%p2656_p0), %s326_s26, 1024  }
  0x89   : > { %1992 = vsyncadd (%p2656_p0), %s326_s26, 4294966272  ;;  %p2657_p11 = scmp.eq.s32.totalorder %s2104_s9, 0 }
  0x8b   : > { %1994 = dma.done.wait (%p2657_p11), [#allocation6], 3072   ;;  %p2658_p8 = pmov %p2657_p11 }
  0x8d   : > { %1996 = vsyncadd (%p2658_p8), [#allocation6], 4294964224  ;;  %p2659_p13 = pmov %p2658_p8 }
  0x8e   : > { %p2660_p6 = pmov %p2658_p8 }
  0x8f   : > { %1998 = dma.done.wait (%p2659_p13), [#allocation9], 2048  }
  0x90   : > { %2000 = vsyncadd (%p2660_p6), [#allocation9], 4294965248  ;;  %v1715_v0 = vld [vmem:[#allocation5] sm:$0xff]   ;;  %v1716_v1 = vld [vmem:[#allocation5 + $0x8] sm:$0xff]   ;;  %v2033_v32 = vmov 0   ;;  %s1435_s11 = sshll.u32 %s2282_s24, 7 }
  0x91   : > { %1578 = vmatprep.subr.bf16.mxu0 %v1715_v0  ;;  %v1717_v2 = vld [vmem:[#allocation5 + $0x10] sm:$0xff]   ;;  %v1718_v3 = vld [vmem:[#allocation5 + $0x18] sm:$0xff]   ;;  %v1723_v4 = vld [vmem:[%s2286_s10] sm:$0xff]   ;;  %779 = vmatprep.mubr.bf16.mxu1 %v2033_v32  ;;  %s2328_s17 = scalar_lea.vmem [#allocation10], %s1435_s11  ;;  %s1496_s20 = sshll.u32 %s2104_s9, 11 }
  0x92   : > { %1579 = vmatpush3.bf16.msra.mxu0 %v1715_v0  ;;  %1594 = vmatprep.mubr.bf16.mxu0 %v1723_v4  ;;  %v1719_v5 = vld [vmem:[#allocation5 + $0x20] sm:$0xff]   ;;  %v1720_v6 = vld [vmem:[#allocation5 + $0x28] sm:$0xff]   ;;  %v1734_v9 = vld [vmem:[#allocation7 + $0x14] ss:$8 sps:$4 sm:$0xff]   ;;  %s1271_s15 = sshll.u32 %s2328_s17, 4  ;;  %s2501_s22 = scalar_lea.hbm %s2630_s7, %s1496_s20  ;;  %s2503_s15 = int_to_ptr.vmem [resolvable:$true] %s1271_s15 }
  0x93   : > { %1580 = vmatprep.subr.bf16.mxu0 %v1716_v1  ;;  %v1731_v7 = vld [vmem:[#allocation7 + $0x4] ss:$8 sps:$4 sm:$0xff]   ;;  %v1733_v8 = vld [vmem:[#allocation7] ss:$8 sps:$4 sm:$0xff]   ;;  %v1721_v10 = vld [vmem:[#allocation5 + $0x30] sm:$0xff]   ;;  %s1253_s26 = scalar_lea.sflag [#allocation4], %s2282_s24 }
  0x94   : > { %747 = vmatprep.subr.bf16.mxu1 %v1731_v7  ;;  %v1736_v11 = vld [vmem:[#allocation7 + $0x10] ss:$8 sps:$4 sm:$0xff]   ;;  %v1737_v12 = vld [vmem:[#allocation7 + $0x24] ss:$8 sps:$4 sm:$0xff]   ;;  %v1739_v14 = vld [vmem:[#allocation7 + $0x20] ss:$8 sps:$4 sm:$0xff]  }
  0x95   : > { %748 = vmatpush1.bf16.msra.mxu1 %v1733_v8  ;;  %v1722_v13 = vld [vmem:[#allocation5 + $0x38] sm:$0xff]   ;;  %v1743_v17 = vld [vmem:[#allocation7 + $0x44] ss:$8 sps:$4 sm:$0xff]   ;;  %v1725_v19 = vld [vmem:[%s2286_s10 + $0x10] sm:$0xff]   ;;  %s2034_s13 = smov [#allocation10]  }
  0x96   : > { %1581 = vmatpush3.bf16.msra.mxu0 %v1716_v1  ;;  %749 = vmatprep.subr.bf16.mxu1 %v1734_v9  ;;  %v1740_v15 = vld [vmem:[#allocation7 + $0x34] ss:$8 sps:$4 sm:$0xff]   ;;  %v1742_v16 = vld [vmem:[#allocation7 + $0x30] ss:$8 sps:$4 sm:$0xff]   ;;  %v1724_v18 = vld [vmem:[%s2286_s10 + $0x8] sm:$0xff]   ;;  %s1921_s14 = sshll.u32 %s2034_s13, 4  ;;  %s1922_s14 = int_to_ptr.vmem [resolvable:$false] %s1921_s14 }
  0x97   : > { %1582 = vmatprep.subr.bf16.mxu0 %v1717_v2  ;;  %v1745_v20 = vld [vmem:[#allocation7 + $0x40] ss:$8 sps:$4 sm:$0xff]   ;;  %v1746_v21 = vld [vmem:[#allocation7 + $0x54] ss:$8 sps:$4 sm:$0xff]   ;;  %v1748_v22 = vld [vmem:[#allocation7 + $0x50] ss:$8 sps:$4 sm:$0xff]   ;;  %p1924_p12 = scmp.lt.s32.totalorder %s2503_s15, %s1922_s14 }
  0x98   : > { %v1726_v23 = vld [vmem:[%s2286_s10 + $0x18] sm:$0xff]   ;;  %v1727_v24 = vld [vmem:[%s2286_s10 + $0x20] sm:$0xff]   ;;  %v1728_v25 = vld [vmem:[%s2286_s10 + $0x28] sm:$0xff]  }
  0x99   : > { %750 = vmatpush1.bf16.msra.mxu1 %v1736_v11  ;;  %v1729_v26 = vld [vmem:[%s2286_s10 + $0x30] sm:$0xff]   ;;  %v1730_v27 = vld [vmem:[%s2286_s10 + $0x38] sm:$0xff]   ;;  %v1749_v28 = vld [vmem:[#allocation7 + $0x64] ss:$8 sps:$4 sm:$0xff]   ;;  %s1917_s10 = scalar_lea.vmem %s2503_s15, 2048 }
  0x9a   : > { %1583 = vmatpush3.bf16.msra.mxu0 %v1717_v2  ;;  %751 = vmatprep.subr.bf16.mxu1 %v1737_v12  ;;  %v1751_v29 = vld [vmem:[#allocation7 + $0x60] ss:$8 sps:$4 sm:$0xff]   ;;  %v1752_v30 = vld [vmem:[#allocation7 + $0x74] ss:$8 sps:$4 sm:$0xff]   ;;  %v1754_v31 = vld [vmem:[#allocation7 + $0x70] ss:$8 sps:$4 sm:$0xff]   ;;  %p1918_p10 = scmp.ne.s32.totalorder %s2503_s15, %s1917_s10 }
  0x9b   : > { %1584 = vmatprep.subr.bf16.mxu0 %v1718_v3  ;;  %v1755_v33 = vld [vmem:[#allocation8 + $0x40] sm:$0xff]   ;;  %v1757_v35 = vld [vmem:[#allocation8 + $0x48] sm:$0xff]   ;;  %v1759_v37 = vld [vmem:[#allocation8 + $0x50] sm:$0xff]  }
  0x9c   : > { %v1756_v34 = vld [vmem:[#allocation8] sm:$0xff]   ;;  %v1758_v36 = vld [vmem:[#allocation8 + $0x8] sm:$0xff]   ;;  %v1760_v38 = vld [vmem:[#allocation8 + $0x10] sm:$0xff]   ;;  %p1919_p3 = pnand %p1918_p10, %p2231_p5 }
  0x9d   : > { %752 = vmatpush1.bf16.msra.mxu1 %v1739_v14  ;;  %v1761_v39 = vld [vmem:[#allocation8 + $0x58] sm:$0xff]   ;;  %v2309_v41 = vld [vmem:[#allocation8 + $0x60] sm:$0xff]   ;;  %v2314_v43 = vld [vmem:[#allocation8 + $0x68] sm:$0xff]  }
  0x9e   : > { %1585 = vmatpush3.bf16.msra.mxu0 %v1718_v3  ;;  %753 = vmatprep.subr.bf16.mxu1 %v1740_v15  ;;  %v1762_v40 = vld [vmem:[#allocation8 + $0x18] sm:$0xff]   ;;  %v2311_v42 = vld [vmem:[#allocation8 + $0x20] sm:$0xff]   ;;  %p1920_p7 = pneg %p1919_p3 }
  0x9f   : > { %1586 = vmatprep.subr.bf16.mxu0 %v1719_v5  ;;  %v2322_v44 = vld [vmem:[%s2625_s2] ss:$0 sm:$0xff] }
  0xa1   : > { %754 = vmatpush1.bf16.msra.mxu1 %v1742_v16 }
  0xa2   : > { %1587 = vmatpush3.bf16.msra.mxu0 %v1719_v5  ;;  %755 = vmatprep.subr.bf16.mxu1 %v1743_v17 }
  0xa3   : > { %1588 = vmatprep.subr.bf16.mxu0 %v1720_v6 }
  0xa5   : > { %756 = vmatpush1.bf16.msra.mxu1 %v1745_v20 }
  0xa6   : > { %1589 = vmatpush3.bf16.msra.mxu0 %v1720_v6  ;;  %757 = vmatprep.subr.bf16.mxu1 %v1746_v21  ;;  %v1766_v21 = vld [vmem:[#allocation8 + $0x28] sm:$0xff]  }
  0xa7   : > { %1590 = vmatprep.subr.bf16.mxu0 %v1721_v10 }
  0xa9   : > { %758 = vmatpush1.bf16.msra.mxu1 %v1748_v22  ;;  %v1767_v22 = vld [vmem:[#allocation8 + $0x70] sm:$0xff]  }
  0xaa   : > { %1591 = vmatpush3.bf16.msra.mxu0 %v1721_v10  ;;  %759 = vmatprep.subr.bf16.mxu1 %v1749_v28 }
  0xab   : > { %1592 = vmatprep.subr.bf16.mxu0 %v1722_v13 }
  0xad   : > { %760 = vmatpush1.bf16.msra.mxu1 %v1751_v29  ;;  %v655_v29 = vld [vmem:[%s2627_s4] sm:$0x3] }
  0xae   : > { %1593 = vmatpush3.bf16.msra.mxu0 %v1722_v13  ;;  %761 = vmatprep.subr.bf16.mxu1 %v1752_v30 }
  0xaf   : > { %1514 = vmatprep.subr.bf16.mxu0 %v1755_v33 }
  0xb1   : > { %1595 = vmatmul.mubr.bf16.vlgmr.msra.gmra.mrb[0].mxu0 %v1724_v18  ;;  %762 = vmatpush1.bf16.msra.mxu1 %v1754_v31 }
  0xb2   : > { %1598 = vmatprep.mubr.bf16.mxu0 %v1725_v19  ;;  %1610 = vmatprep.subr.bf16.mxu1 %v1755_v33 }
  0xb3   : > { %1515 = vmatpush3.bf16.msra.mxu0 %v1756_v34 }
  0xb4   : > { %1516 = vmatprep.subr.bf16.mxu0 %v1757_v35 }
  0xb7   : > { %1517 = vmatpush3.bf16.msra.mxu0 %v1758_v36 }
  0xb8   : > { %1518 = vmatprep.subr.bf16.mxu0 %v1759_v37 }
  0xb9   : > { %1599 = vmatmul.mubr.bf16.gmra.mrb[4].mxu0 %v1726_v23  ;;  %v1768_v23 = vld [vmem:[#allocation8 + $0x30] sm:$0xff]  }
  0xba   : > { %1602 = vmatprep.mubr.bf16.mxu0 %v1727_v24  ;;  %v1769_v24 = vld [vmem:[#allocation8 + $0x78] sm:$0xff]  }
  0xbb   : > { %1519 = vmatpush3.bf16.msra.mxu0 %v1760_v38 }
  0xbc   : > { %1520 = vmatprep.subr.bf16.mxu0 %v1761_v39 }
  0xbf   : > { %1521 = vmatpush3.bf16.msra.mxu0 %v1762_v40 }
  0xc0   : > { %1522 = vmatprep.subr.bf16.mxu0 %v2309_v41 }
  0xc1   : > { %1603 = vmatmul.mubr.bf16.gmra.mrb[8].mxu0 %v1728_v25  ;;  %v1770_v25 = vld [vmem:[#allocation8 + $0x38] sm:$0xff]  }
  0xc2   : > { %1606 = vmatprep.mubr.bf16.mxu0 %v1729_v26  ;;  %v657_v26 = vlaneseq }
  0xc3   : > { %1523 = vmatpush3.bf16.msra.mxu0 %v2311_v42 }
  0xc4   : > { %1524 = vmatprep.subr.bf16.mxu0 %v2314_v43 }
  0xc7   : > { %1525 = vmatpush3.bf16.msra.mxu0 %v1766_v21 }
  0xc8   : > { %1526 = vmatprep.subr.bf16.mxu0 %v1767_v22 }
  0xc9   : > { %1607 = vmatmul.mubr.bf16.gmra.mrb[12].mxu0 %v1730_v27  ;;  %v658_v27 = vshrl.u32 %v657_v26, 7 }
  0xcb   : > { %1527 = vmatpush3.bf16.msra.mxu0 %v1768_v23  ;;  %v659_v28 = vsub.s32 0, %v658_v27  ;;  %v663_v30 = vsub.s32 1, %v658_v27 }
  0xcc   : > { %1528 = vmatprep.subr.bf16.mxu0 %v1769_v24 }
  0xcd   : > { %v2373_v31 = vrot.slane %v655_v29, %v659_v28 }
  0xcf   : > { %1529 = vmatpush3.bf16.msra.mxu0 %v1770_v25 }
 0x184   : > { %v1596_v45 = vpop.f32.mrb[0].mxu0 }
 0x185   : > { %v561_v46 = vadd.f32 %v1596_v45, %v2322_v44  ;;  %v552_v47 = vpop.f32.mrb[1].mxu0 }
 0x186   : > { %v553_v48 = vadd.f32 %v2322_v44, %v552_v47  ;;  %v1597_v49 = vpop.f32.mrb[2].mxu0 }
 0x187   : > { %617 = vst [vmem:[%s2328_s17 + $0x10] sm:$0xff] %v561_v46  ;;  %v564_v50 = vadd.f32 %v1597_v49, %v2322_v44  ;;  %v555_v51 = vpop.f32.mrb[3].mxu0 }
 0x188   : > { %615 = vst [vmem:[%s2328_s17] sm:$0xff] %v553_v48  ;;  %v556_v52 = vadd.f32 %v2322_v44, %v555_v51 }
 0x189   : > { %618 = vst [vmem:[%s2328_s17 + $0x18] sm:$0xff] %v564_v50  ;;  %v632_v53 = vpack.c.bf16 %v564_v50, %v561_v46 }
 0x18a   : > { %616 = vst [vmem:[%s2328_s17 + $0x8] sm:$0xff] %v556_v52  ;;  %v631_v54 = vpack.c.bf16 %v556_v52, %v553_v48 }
 0x18c   : > { %780 = vmatmul.mubr.bf16.vlgmr.msra.gmra.mrb[0].mxu1 %v631_v54  ;;  %v1600_v55 = vpop.f32.mrb[4].mxu0 }
 0x18d   : > { %v577_v56 = vadd.f32 %v1600_v55, %v2322_v44  ;;  %v568_v57 = vpop.f32.mrb[5].mxu0  ;;  %789 = vmatprep.mubr.bf16.mxu1 %v2033_v32  ;;  %1618 = vmatpush3.bf16.msra.mxu1 %v1756_v34 }
 0x18e   : > { %v569_v58 = vadd.f32 %v2322_v44, %v568_v57  ;;  %v1601_v59 = vpop.f32.mrb[6].mxu0  ;;  %1611 = vmatprep.subr.bf16.mxu1 %v1757_v35 }
 0x18f   : > { %621 = vst [vmem:[%s2328_s17 + $0x30] sm:$0xff] %v577_v56  ;;  %v580_v60 = vadd.f32 %v1601_v59, %v2322_v44  ;;  %v571_v61 = vpop.f32.mrb[7].mxu0 }
 0x190   : > { %619 = vst [vmem:[%s2328_s17 + $0x20] sm:$0xff] %v569_v58  ;;  %v572_v62 = vadd.f32 %v2322_v44, %v571_v61 }
 0x191   : > { %622 = vst [vmem:[%s2328_s17 + $0x38] sm:$0xff] %v580_v60  ;;  %v634_v63 = vpack.c.bf16 %v580_v60, %v577_v56  ;;  %1619 = vmatpush3.bf16.msra.mxu1 %v1758_v36 }
 0x192   : > { %620 = vst [vmem:[%s2328_s17 + $0x28] sm:$0xff] %v572_v62  ;;  %v633_v0 = vpack.c.bf16 %v572_v62, %v569_v58  ;;  %1612 = vmatprep.subr.bf16.mxu1 %v1759_v37 }
 0x194   : > { %790 = vmatmul.mubr.bf16.gmra.mrb[4].mxu1 %v632_v53  ;;  %v1604_v1 = vpop.f32.mrb[8].mxu0 }
 0x195   : > { %799 = vmatprep.mubr.bf16.mxu1 %v2033_v32  ;;  %v593_v2 = vadd.f32 %v1604_v1, %v2322_v44  ;;  %v584_v3 = vpop.f32.mrb[9].mxu0  ;;  %1620 = vmatpush3.bf16.msra.mxu1 %v1760_v38 }
 0x196   : > { %v585_v4 = vadd.f32 %v2322_v44, %v584_v3  ;;  %v1605_v5 = vpop.f32.mrb[10].mxu0  ;;  %1613 = vmatprep.subr.bf16.mxu1 %v1761_v39 }
 0x197   : > { %625 = vst [vmem:[%s2328_s17 + $0x50] sm:$0xff] %v593_v2  ;;  %v596_v6 = vadd.f32 %v1605_v5, %v2322_v44  ;;  %v587_v7 = vpop.f32.mrb[11].mxu0 }
 0x198   : > { %623 = vst [vmem:[%s2328_s17 + $0x40] sm:$0xff] %v585_v4  ;;  %v588_v8 = vadd.f32 %v2322_v44, %v587_v7 }
 0x199   : > { %626 = vst [vmem:[%s2328_s17 + $0x58] sm:$0xff] %v596_v6  ;;  %v636_v9 = vpack.c.bf16 %v596_v6, %v593_v2  ;;  %1621 = vmatpush3.bf16.msra.mxu1 %v1762_v40 }
 0x19a   : > { %624 = vst [vmem:[%s2328_s17 + $0x48] sm:$0xff] %v588_v8  ;;  %v635_v10 = vpack.c.bf16 %v588_v8, %v585_v4  ;;  %1614 = vmatprep.subr.bf16.mxu1 %v2309_v41 }
 0x19c   : > { %800 = vmatmul.mubr.bf16.gmra.mrb[8].mxu1 %v633_v0  ;;  %v1608_v11 = vpop.f32.mrb[12].mxu0 }
 0x19d   : > { %809 = vmatprep.mubr.bf16.mxu1 %v2033_v32  ;;  %v609_v12 = vadd.f32 %v1608_v11, %v2322_v44  ;;  %v600_v13 = vpop.f32.mrb[13].mxu0  ;;  %1622 = vmatpush3.bf16.msra.mxu1 %v2311_v42 }
 0x19e   : > { %v601_v14 = vadd.f32 %v2322_v44, %v600_v13  ;;  %v1609_v15 = vpop.f32.mrb[14].mxu0  ;;  %1615 = vmatprep.subr.bf16.mxu1 %v2314_v43 }
 0x19f   : > { %629 = vst [vmem:[%s2328_s17 + $0x70] sm:$0xff] %v609_v12  ;;  %v612_v16 = vadd.f32 %v1609_v15, %v2322_v44  ;;  %v603_v17 = vpop.f32.mrb[15].mxu0 }
 0x1a0   : > { %627 = vst [vmem:[%s2328_s17 + $0x60] sm:$0xff] %v601_v14  ;;  %v604_v18 = vadd.f32 %v2322_v44, %v603_v17 }
 0x1a1   : > { %630 = vst [vmem:[%s2328_s17 + $0x78] sm:$0xff] %v612_v16  ;;  %v638_v19 = vpack.c.bf16 %v612_v16, %v609_v12  ;;  %1623 = vmatpush3.bf16.msra.mxu1 %v1766_v21 }
 0x1a2   : > { %628 = vst [vmem:[%s2328_s17 + $0x68] sm:$0xff] %v604_v18  ;;  %v637_v20 = vpack.c.bf16 %v604_v18, %v601_v14  ;;  %1616 = vmatprep.subr.bf16.mxu1 %v1767_v22  ;;  %s1923_s17 = scalar_lea.vmem %s1922_s14, 4096 }
 0x1a3   : > { %p1925_p1 = scmp.lt.s32.totalorder %s1923_s17, %s1917_s10 }
 0x1a4   : > { %810 = vmatmul.mubr.bf16.gmra.mrb[12].mxu1 %v634_v63 }
 0x1a5   : > { %819 = vmatprep.mubr.bf16.mxu1 %v2033_v32  ;;  %1624 = vmatpush3.bf16.msra.mxu1 %v1768_v23  ;;  %p1926_p2 = por %p1925_p1, %p1924_p12 }
 0x1a6   : > { %1617 = vmatprep.subr.bf16.mxu1 %v1769_v24 }
 0x1a7   : > { %p1927_p4 = pnand %p1926_p2, %p1920_p7 }
 0x1a9   : > { %1625 = vmatpush3.bf16.msra.mxu1 %v1770_v25 }
 0x1ac   : > { %820 = vmatmul.mubr.bf16.gmra.mrb[16].mxu1 %v635_v10 }
 0x1ad   : > { %829 = vmatprep.mubr.bf16.mxu1 %v2033_v32 }
 0x1b4   : > { %830 = vmatmul.mubr.bf16.gmra.mrb[20].mxu1 %v636_v9 }
 0x1b5   : > { %839 = vmatprep.mubr.bf16.mxu1 %v2033_v32 }
 0x1bc   : > { %840 = vmatmul.mubr.bf16.gmra.mrb[24].mxu1 %v637_v20 }
 0x1bd   : > { %849 = vmatprep.mubr.bf16.mxu1 %v2033_v32  ;;  %v2375_v32 = vrot.slane %v655_v29, %v663_v30 }
 0x1c4   : > { %850 = vmatmul.mubr.bf16.gmra.mrb[28].mxu1 %v638_v19 }
 0x25f   : > { %v781_v33 = vpop.f32.mrb[0].mxu1 }
 0x260   : > { %v782_v34 = vadd.f32 %v781_v33, %v2373_v31  ;;  %v783_v35 = vpop.f32.mrb[1].mxu1 }
 0x261   : > { %v784_v36 = vadd.f32 %v783_v35, %v2375_v32  ;;  %v785_v37 = vpop.f32.mrb[2].mxu1 }
 0x262   : > { %v786_v38 = vadd.f32 %v785_v37, %v2373_v31  ;;  %v787_v39 = vpop.f32.mrb[3].mxu1  ;;  %v860_v41 = vmax.f32 %v782_v34, 0.0 }
 0x263   : > { %v788_v40 = vadd.f32 %v787_v39, %v2375_v32  ;;  %v861_v43 = vmax.f32 %v784_v36, 0.0 }
 0x264   : > { %v862_v42 = vmax.f32 %v786_v38, 0.0 }
 0x265   : > { %v863_v44 = vmax.f32 %v788_v40, 0.0 }
 0x266   : > { %v892_v45 = vpack.c.bf16 %v862_v42, %v860_v41 }
 0x267   : > { %v893_v46 = vpack.c.bf16 %v863_v44, %v861_v43  ;;  %v791_v47 = vpop.f32.mrb[4].mxu1 }
 0x268   : > { %v792_v48 = vadd.f32 %v791_v47, %v2373_v31  ;;  %v793_v49 = vpop.f32.mrb[5].mxu1 }
 0x269   : > { %v794_v50 = vadd.f32 %v793_v49, %v2375_v32  ;;  %v795_v51 = vpop.f32.mrb[6].mxu1  ;;  %1075 = vmatprep.mubr.bf16.mxu0 %v893_v46 }
 0x26a   : > { %v796_v52 = vadd.f32 %v795_v51, %v2373_v31  ;;  %v797_v53 = vpop.f32.mrb[7].mxu1  ;;  %1076 = vmatmul.mubr.bf16.vlgmr.msra.gmra.mrb[16].mxu0 %v892_v45  ;;  %v864_v55 = vmax.f32 %v792_v48, 0.0 }
 0x26b   : > { %v798_v54 = vadd.f32 %v797_v53, %v2375_v32  ;;  %v865_v57 = vmax.f32 %v794_v50, 0.0 }
 0x26c   : > { %v866_v56 = vmax.f32 %v796_v52, 0.0 }
 0x26d   : > { %v867_v58 = vmax.f32 %v798_v54, 0.0 }
 0x26e   : > { %v894_v59 = vpack.c.bf16 %v866_v56, %v864_v55 }
 0x26f   : > { %v895_v60 = vpack.c.bf16 %v867_v58, %v865_v57  ;;  %v801_v61 = vpop.f32.mrb[8].mxu1 }
 0x270   : > { %v802_v62 = vadd.f32 %v801_v61, %v2373_v31  ;;  %v803_v63 = vpop.f32.mrb[9].mxu1 }
 0x271   : > { %v804_v0 = vadd.f32 %v803_v63, %v2375_v32  ;;  %v805_v1 = vpop.f32.mrb[10].mxu1  ;;  %1083 = vmatprep.mubr.bf16.mxu0 %v895_v60 }
 0x272   : > { %v806_v2 = vadd.f32 %v805_v1, %v2373_v31  ;;  %v807_v3 = vpop.f32.mrb[11].mxu1  ;;  %1084 = vmatmul.mubr.bf16.gmra.mrb[20].mxu0 %v894_v59  ;;  %v868_v5 = vmax.f32 %v802_v62, 0.0 }
 0x273   : > { %v808_v4 = vadd.f32 %v807_v3, %v2375_v32  ;;  %v869_v7 = vmax.f32 %v804_v0, 0.0 }
 0x274   : > { %v870_v6 = vmax.f32 %v806_v2, 0.0 }
 0x275   : > { %v871_v8 = vmax.f32 %v808_v4, 0.0 }
 0x276   : > { %v896_v9 = vpack.c.bf16 %v870_v6, %v868_v5 }
 0x277   : > { %v897_v10 = vpack.c.bf16 %v871_v8, %v869_v7  ;;  %v811_v11 = vpop.f32.mrb[12].mxu1 }
 0x278   : > { %v812_v12 = vadd.f32 %v811_v11, %v2373_v31  ;;  %v813_v13 = vpop.f32.mrb[13].mxu1 }
 0x279   : > { %v814_v14 = vadd.f32 %v813_v13, %v2375_v32  ;;  %v815_v15 = vpop.f32.mrb[14].mxu1  ;;  %1091 = vmatprep.mubr.bf16.mxu0 %v897_v10 }
 0x27a   : > { %v816_v16 = vadd.f32 %v815_v15, %v2373_v31  ;;  %v817_v17 = vpop.f32.mrb[15].mxu1  ;;  %1092 = vmatmul.mubr.bf16.gmra.mrb[24].mxu0 %v896_v9  ;;  %v872_v19 = vmax.f32 %v812_v12, 0.0 }
 0x27b   : > { %v818_v18 = vadd.f32 %v817_v17, %v2375_v32  ;;  %v873_v21 = vmax.f32 %v814_v14, 0.0 }
 0x27c   : > { %v874_v20 = vmax.f32 %v816_v16, 0.0 }
 0x27d   : > { %v875_v22 = vmax.f32 %v818_v18, 0.0 }
 0x27e   : > { %v898_v23 = vpack.c.bf16 %v874_v20, %v872_v19 }
 0x27f   : > { %v899_v24 = vpack.c.bf16 %v875_v22, %v873_v21  ;;  %v821_v25 = vpop.f32.mrb[16].mxu1  ;;  %v2412_v21 = vld [vmem:[%s2629_s6] ss:$0 sm:$0xff] }
 0x280   : > { %v822_v26 = vadd.f32 %v821_v25, %v2373_v31  ;;  %v823_v27 = vpop.f32.mrb[17].mxu1 }
 0x281   : > { %v824_v28 = vadd.f32 %v823_v27, %v2375_v32  ;;  %v825_v29 = vpop.f32.mrb[18].mxu1  ;;  %1099 = vmatprep.mubr.bf16.mxu0 %v899_v24 }
 0x282   : > { %v826_v30 = vadd.f32 %v825_v29, %v2373_v31  ;;  %v827_v33 = vpop.f32.mrb[19].mxu1  ;;  %1100 = vmatmul.mubr.bf16.gmra.mrb[28].mxu0 %v898_v23  ;;  %v876_v35 = vmax.f32 %v822_v26, 0.0 }
 0x283   : > { %v828_v34 = vadd.f32 %v827_v33, %v2375_v32  ;;  %v877_v37 = vmax.f32 %v824_v28, 0.0 }
 0x284   : > { %v878_v36 = vmax.f32 %v826_v30, 0.0 }
 0x285   : > { %v879_v38 = vmax.f32 %v828_v34, 0.0 }
 0x286   : > { %v900_v39 = vpack.c.bf16 %v878_v36, %v876_v35 }
 0x287   : > { %v901_v40 = vpack.c.bf16 %v879_v38, %v877_v37  ;;  %v831_v41 = vpop.f32.mrb[20].mxu1 }
 0x288   : > { %v832_v42 = vadd.f32 %v831_v41, %v2373_v31  ;;  %v833_v43 = vpop.f32.mrb[21].mxu1 }
 0x289   : > { %v834_v44 = vadd.f32 %v833_v43, %v2375_v32  ;;  %v835_v45 = vpop.f32.mrb[22].mxu1  ;;  %1107 = vmatprep.mubr.bf16.mxu0 %v901_v40 }
 0x28a   : > { %v836_v46 = vadd.f32 %v835_v45, %v2373_v31  ;;  %v837_v47 = vpop.f32.mrb[23].mxu1  ;;  %1108 = vmatmul.mubr.bf16.gmra.mrb[32].mxu0 %v900_v39  ;;  %v880_v49 = vmax.f32 %v832_v42, 0.0 }
 0x28b   : > { %v838_v48 = vadd.f32 %v837_v47, %v2375_v32  ;;  %v881_v51 = vmax.f32 %v834_v44, 0.0 }
 0x28c   : > { %v882_v50 = vmax.f32 %v836_v46, 0.0 }
 0x28d   : > { %v883_v52 = vmax.f32 %v838_v48, 0.0 }
 0x28e   : > { %v902_v53 = vpack.c.bf16 %v882_v50, %v880_v49 }
 0x28f   : > { %v903_v54 = vpack.c.bf16 %v883_v52, %v881_v51  ;;  %v841_v55 = vpop.f32.mrb[24].mxu1 }
 0x290   : > { %v842_v56 = vadd.f32 %v841_v55, %v2373_v31  ;;  %v843_v57 = vpop.f32.mrb[25].mxu1 }
 0x291   : > { %v844_v58 = vadd.f32 %v843_v57, %v2375_v32  ;;  %v845_v59 = vpop.f32.mrb[26].mxu1  ;;  %1115 = vmatprep.mubr.bf16.mxu0 %v903_v54 }
 0x292   : > { %v846_v60 = vadd.f32 %v845_v59, %v2373_v31  ;;  %v847_v61 = vpop.f32.mrb[27].mxu1  ;;  %1116 = vmatmul.mubr.bf16.gmra.mrb[36].mxu0 %v902_v53  ;;  %v884_v63 = vmax.f32 %v842_v56, 0.0 }
 0x293   : > { %v848_v62 = vadd.f32 %v847_v61, %v2375_v32  ;;  %v885_v1 = vmax.f32 %v844_v58, 0.0 }
 0x294   : > { %v886_v0 = vmax.f32 %v846_v60, 0.0 }
 0x295   : > { %v887_v2 = vmax.f32 %v848_v62, 0.0 }
 0x296   : > { %v904_v3 = vpack.c.bf16 %v886_v0, %v884_v63 }
 0x297   : > { %v905_v4 = vpack.c.bf16 %v887_v2, %v885_v1  ;;  %v851_v5 = vpop.f32.mrb[28].mxu1 }
 0x298   : > { %v852_v6 = vadd.f32 %v851_v5, %v2373_v31  ;;  %v853_v7 = vpop.f32.mrb[29].mxu1 }
 0x299   : > { %v854_v8 = vadd.f32 %v853_v7, %v2375_v32  ;;  %v855_v9 = vpop.f32.mrb[30].mxu1  ;;  %1123 = vmatprep.mubr.bf16.mxu1 %v905_v4 }
 0x29a   : > { %v856_v10 = vadd.f32 %v855_v9, %v2373_v31  ;;  %v857_v11 = vpop.f32.mrb[31].mxu1  ;;  %1124 = vmatmul.mubr.bf16.vlgmr.msra.gmra.mrb[32].mxu1 %v904_v3  ;;  %v888_v13 = vmax.f32 %v852_v6, 0.0 }
 0x29b   : > { %v858_v12 = vadd.f32 %v857_v11, %v2375_v32  ;;  %v889_v15 = vmax.f32 %v854_v8, 0.0 }
 0x29c   : > { %v890_v14 = vmax.f32 %v856_v10, 0.0 }
 0x29d   : > { %v891_v16 = vmax.f32 %v858_v12, 0.0 }
 0x29e   : > { %v906_v17 = vpack.c.bf16 %v890_v14, %v888_v13 }
 0x29f   : > { %v907_v18 = vpack.c.bf16 %v891_v16, %v889_v15 }
 0x2a1   : > { %1131 = vmatprep.mubr.bf16.mxu1 %v907_v18 }
 0x2a2   : > { %1132 = vmatmul.mubr.bf16.gmra.mrb[36].mxu1 %v906_v17 }
 0x33d   : > { %v1530_v19 = vpop.f32.mrb[16].mxu0 }
 0x33e   : > { %v1531_v20 = vpop.f32.mrb[17].mxu0 }
 0x33f   : > { %v1532_v31 = vadd.f32 %v1531_v20, %v1530_v19  ;;  %v1533_v22 = vpop.f32.mrb[18].mxu0 }
 0x340   : > { %v1534_v23 = vpop.f32.mrb[19].mxu0 }
 0x341   : > { %v1535_v24 = vadd.f32 %v1534_v23, %v1533_v22  ;;  %v2415_v32 = vadd.f32 %v1532_v31, %v2412_v21 }
 0x343   : > { %v2418_v25 = vadd.f32 %v1535_v24, %v2412_v21  ;;  %v1140_v26 = vmul.f32 %v2415_v32, %v2415_v32 }
 0x345   : > { %v1536_v27 = vpop.f32.mrb[20].mxu0  ;;  %1156 = vadd.xlane.f32.xlu0 %v1140_v26  ;;  %v1141_v33 = vmul.f32 %v2418_v25, %v2418_v25 }
 0x346   : > { %v1537_v28 = vpop.f32.mrb[21].mxu0 }
 0x347   : > { %v1538_v29 = vadd.f32 %v1537_v28, %v1536_v27  ;;  %v1539_v30 = vpop.f32.mrb[22].mxu0 }
 0x348   : > { %v1540_v34 = vpop.f32.mrb[23].mxu0 }
 0x349   : > { %v1541_v35 = vadd.f32 %v1540_v34, %v1539_v30  ;;  %1158 = vadd.xlane.f32.xlu0 %v1141_v33  ;;  %v2425_v36 = vadd.f32 %v1538_v29, %v2412_v21 }
 0x34b   : > { %v2428_v37 = vadd.f32 %v1541_v35, %v2412_v21  ;;  %v1142_v38 = vmul.f32 %v2425_v36, %v2425_v36 }
 0x34d   : > { %v1542_v39 = vpop.f32.mrb[24].mxu0  ;;  %1160 = vadd.xlane.f32.xlu1 %v1142_v38  ;;  %v1143_v43 = vmul.f32 %v2428_v37, %v2428_v37 }
 0x34e   : > { %v1543_v40 = vpop.f32.mrb[25].mxu0 }
 0x34f   : > { %v1544_v41 = vadd.f32 %v1543_v40, %v1542_v39  ;;  %v1545_v42 = vpop.f32.mrb[26].mxu0 }
 0x350   : > { %v1546_v44 = vpop.f32.mrb[27].mxu0 }
 0x351   : > { %v2435_v45 = vadd.f32 %v1544_v41, %v2412_v21  ;;  %v1547_v46 = vadd.f32 %v1546_v44, %v1545_v42  ;;  %1162 = vadd.xlane.f32.xlu1 %v1143_v43 }
 0x353   : > { %v2438_v47 = vadd.f32 %v1547_v46, %v2412_v21  ;;  %v1144_v48 = vmul.f32 %v2435_v45, %v2435_v45 }
 0x355   : > { %v1548_v49 = vpop.f32.mrb[28].mxu0  ;;  %1164 = vadd.xlane.f32.xlu0 %v1144_v48  ;;  %v1145_v50 = vmul.f32 %v2438_v47, %v2438_v47 }
 0x356   : > { %v1549_v51 = vpop.f32.mrb[29].mxu0 }
 0x357   : > { %v1550_v52 = vadd.f32 %v1549_v51, %v1548_v49  ;;  %v1551_v53 = vpop.f32.mrb[30].mxu0  ;;  %1166 = vadd.xlane.f32.xlu1 %v1145_v50 }
 0x358   : > { %v1552_v54 = vpop.f32.mrb[31].mxu0 }
 0x359   : > { %v2445_v55 = vadd.f32 %v1550_v52, %v2412_v21  ;;  %v1553_v56 = vadd.f32 %v1552_v54, %v1551_v53 }
 0x35b   : > { %v2448_v57 = vadd.f32 %v1553_v56, %v2412_v21  ;;  %v1146_v58 = vmul.f32 %v2445_v55, %v2445_v55 }
 0x35d   : > { %v1554_v59 = vpop.f32.mrb[32].mxu0  ;;  %1168 = vadd.xlane.f32.xlu0 %v1146_v58  ;;  %v1147_v60 = vmul.f32 %v2448_v57, %v2448_v57 }
 0x35e   : > { %v1555_v61 = vpop.f32.mrb[33].mxu0 }
 0x35f   : > { %v1556_v62 = vadd.f32 %v1555_v61, %v1554_v59  ;;  %v1557_v63 = vpop.f32.mrb[34].mxu0  ;;  %1170 = vadd.xlane.f32.xlu1 %v1147_v60 }
 0x360   : > { %v1558_v0 = vpop.f32.mrb[35].mxu0 }
 0x361   : > { %v2455_v1 = vadd.f32 %v1556_v62, %v2412_v21  ;;  %v1559_v2 = vadd.f32 %v1558_v0, %v1557_v63 }
 0x363   : > { %v2458_v3 = vadd.f32 %v1559_v2, %v2412_v21  ;;  %v1148_v4 = vmul.f32 %v2455_v1, %v2455_v1 }
 0x365   : > { %v1560_v5 = vpop.f32.mrb[36].mxu0  ;;  %1172 = vadd.xlane.f32.xlu0 %v1148_v4  ;;  %v1149_v6 = vmul.f32 %v2458_v3, %v2458_v3 }
 0x366   : > { %v1561_v7 = vpop.f32.mrb[37].mxu0 }
 0x367   : > { %v1562_v8 = vadd.f32 %v1561_v7, %v1560_v5  ;;  %v1563_v9 = vpop.f32.mrb[38].mxu0  ;;  %1174 = vadd.xlane.f32.xlu1 %v1149_v6 }
 0x368   : > { %v1564_v10 = vpop.f32.mrb[39].mxu0 }
 0x369   : > { %v2465_v11 = vadd.f32 %v1562_v8, %v2412_v21  ;;  %v1565_v12 = vadd.f32 %v1564_v10, %v1563_v9 }
 0x36b   : > { %v2468_v13 = vadd.f32 %v1565_v12, %v2412_v21  ;;  %v1150_v14 = vmul.f32 %v2465_v11, %v2465_v11 }
 0x36d   : > { %v1566_v15 = vpop.f32.mrb[32].mxu1  ;;  %1176 = vadd.xlane.f32.xlu0 %v1150_v14  ;;  %v1151_v16 = vmul.f32 %v2468_v13, %v2468_v13 }
 0x36e   : > { %v1567_v17 = vpop.f32.mrb[33].mxu1 }
 0x36f   : > { %v1568_v18 = vadd.f32 %v1567_v17, %v1566_v15  ;;  %v1569_v19 = vpop.f32.mrb[34].mxu1  ;;  %1178 = vadd.xlane.f32.xlu1 %v1151_v16 }
 0x370   : > { %v1570_v20 = vpop.f32.mrb[35].mxu1 }
 0x371   : > { %v2475_v31 = vadd.f32 %v1568_v18, %v2412_v21  ;;  %v1571_v22 = vadd.f32 %v1570_v20, %v1569_v19 }
 0x373   : > { %v2478_v23 = vadd.f32 %v1571_v22, %v2412_v21  ;;  %v1152_v24 = vmul.f32 %v2475_v31, %v2475_v31 }
 0x375   : > { %v1572_v26 = vpop.f32.mrb[36].mxu1  ;;  %1180 = vadd.xlane.f32.xlu0 %v1152_v24  ;;  %v1153_v27 = vmul.f32 %v2478_v23, %v2478_v23 }
 0x376   : > { %v1573_v28 = vpop.f32.mrb[37].mxu1 }
 0x377   : > { %v1574_v29 = vadd.f32 %v1573_v28, %v1572_v26  ;;  %v1575_v30 = vpop.f32.mrb[38].mxu1  ;;  %1182 = vadd.xlane.f32.xlu1 %v1153_v27 }
 0x378   : > { %v1576_v33 = vpop.f32.mrb[39].mxu1 }
 0x379   : > { %v2485_v34 = vadd.f32 %v1574_v29, %v2412_v21  ;;  %v1577_v35 = vadd.f32 %v1576_v33, %v1575_v30 }
 0x37b   : > { %v2488_v38 = vadd.f32 %v1577_v35, %v2412_v21  ;;  %v1154_v39 = vmul.f32 %v2485_v34, %v2485_v34 }
 0x37d   : > { %1184 = vadd.xlane.f32.xlu0 %v1154_v39  ;;  %v1155_v40 = vmul.f32 %v2488_v38, %v2488_v38 }
 0x37f   : > { %1186 = vadd.xlane.f32.xlu1 %v1155_v40 }
 0x380   : > { %1930 = shalt.err (!%p1927_p4)
}
 0x381   : > { %s1931_s23 = scalar_lea.hbm %s2501_s22, 2048  ;;  %s1935_s27 = scalar_lea.hbm %s2630_s7, 4096 }
 0x382   : > { %p1932_p9 = scmp.ne.s32.totalorder %s2501_s22, %s1931_s23  ;;  %p1936_p8 = scmp.lt.u32.totalorder %s2501_s22, %s2630_s7 }
 0x383   : > { %p1937_p13 = scmp.lt.u32.totalorder %s1935_s27, %s1931_s23  ;;  %p1939_p10 = scmp.lt.u32.totalorder %s1931_s23, %s2501_s22 }
 0x384   : > { %p1933_p0 = pnand %p1932_p9, %p2231_p5 }
 0x385   : > { %p1938_p6 = por %p1937_p13, %p1936_p8 }
 0x386   : > { %p1934_p11 = pneg %p1933_p0 }
 0x387   : > { %p1940_p3 = por %p1939_p10, %p1938_p6 }
 0x389   : > { %p1941_p7 = pnand %p1940_p3, %p1934_p11 }
 0x38b   : > { %1944 = shalt.err (!%p1941_p7)
}
 0x38c   : > { %s2035_s10 = smov 128   ;;  %s2036_s13 = smov 8  }
 0x38d   : > { %1640 = dma.vmem_to_hbm [thread:$0]  (%p2231_p5), %s2503_s15, 2048, %s2501_s22, %s1253_s26, %s2035_s10, %s2035_s10, %s2036_s13  }
 0x38e   : > { %s2535_s14 = scalar_lea.vmem [#allocation11], %s1435_s11  ;;  %s2573_s26 = scalar_lea.hbm %s2631_s8, %s1496_s20 }
 0x38f   : > { %s1287_s11 = sshll.u32 %s2535_s14, 4  ;;  %s1258_s17 = scalar_lea.sflag [#allocation12], %s2282_s24  ;;  %s2575_s11 = int_to_ptr.vmem [resolvable:$true] %s1287_s11 }
 0x390   : > { %s1945_s23 = scalar_lea.vmem %s2575_s11, 2048  ;;  %s2037_s18 = smov [#allocation11]  }
 0x391   : > { %p1946_p12 = scmp.ne.s32.totalorder %s2575_s11, %s1945_s23  ;;  %s1949_s1 = sshll.u32 %s2037_s18, 4  ;;  %s1950_s1 = int_to_ptr.vmem [resolvable:$false] %s1949_s1 }
 0x392   : > { %s1951_s9 = scalar_lea.vmem %s1950_s1, 4096  ;;  %p1952_p4 = scmp.lt.s32.totalorder %s2575_s11, %s1950_s1 }
 0x393   : > { %p1947_p1 = pnand %p1946_p12, %p2231_p5  ;;  %p1953_p9 = scmp.lt.s32.totalorder %s1951_s9, %s1945_s23 }
 0x395   : > { %p1948_p2 = pneg %p1947_p1  ;;  %p1954_p0 = por %p1953_p9, %p1952_p4 }
 0x397   : > { %p1955_p11 = pnand %p1954_p0, %p1948_p2 }
 0x3d2   : > { %v1157_v21 = vpop.xlane.xlu0 %1156 }
 0x3d3   : > { %v1188_v41 = vmax.f32 %v1157_v21, 1e-24 }
 0x3d5   : > { %1771 = vrsqrt.f32 %v1188_v41 }
 0x3d6   : > { %v1159_v42 = vpop.xlane.xlu0 %1158 }
 0x3d7   : > { %v1189_v43 = vmax.f32 %v1159_v42, 1e-24 }
 0x3d9   : > { %1773 = vrsqrt.f32 %v1189_v43 }
 0x3da   : > { %v1161_v44 = vpop.xlane.xlu1 %1160 }
 0x3db   : > { %v1190_v46 = vmax.f32 %v1161_v44, 1e-24 }
 0x3dd   : > { %1775 = vrsqrt.f32 %v1190_v46 }
 0x3de   : > { %v1163_v48 = vpop.xlane.xlu1 %1162 }
 0x3df   : > { %v1772_v49 = vpop.eup %1771  ;;  %v1191_v50 = vmax.f32 %v1163_v48, 1e-24 }
 0x3e0   : > { %v1220_v51 = vmul.f32 %v1772_v49, %v2415_v32 }
 0x3e1   : > { %1777 = vrsqrt.f32 %v1191_v50 }
 0x3e2   : > { %1236 = vst [vmem:[%s2535_s14] sm:$0xff] %v1220_v51  ;;  %v1165_v52 = vpop.xlane.xlu0 %1164 }
 0x3e3   : > { %v1774_v53 = vpop.eup %1773  ;;  %v1192_v54 = vmax.f32 %v1165_v52, 1e-24 }
 0x3e4   : > { %v1221_v56 = vmul.f32 %v1774_v53, %v2418_v25  ;;  %v1167_v58 = vpop.xlane.xlu1 %1166 }
 0x3e5   : > { %1779 = vrsqrt.f32 %v1192_v54  ;;  %v1193_v59 = vmax.f32 %v1167_v58, 1e-24 }
 0x3e6   : > { %1237 = vst [vmem:[%s2535_s14 + $0x8] sm:$0xff] %v1221_v56 }
 0x3e7   : > { %v1776_v60 = vpop.eup %1775  ;;  %1781 = vrsqrt.f32 %v1193_v59 }
 0x3e8   : > { %v1222_v32 = vmul.f32 %v1776_v60, %v2425_v36 }
 0x3ea   : > { %1238 = vst [vmem:[%s2535_s14 + $0x10] sm:$0xff] %v1222_v32  ;;  %v1169_v61 = vpop.xlane.xlu0 %1168 }
 0x3eb   : > { %v1778_v62 = vpop.eup %1777  ;;  %v1194_v63 = vmax.f32 %v1169_v61, 1e-24 }
 0x3ec   : > { %v1223_v0 = vmul.f32 %v1778_v62, %v2428_v37  ;;  %v1171_v2 = vpop.xlane.xlu1 %1170 }
 0x3ed   : > { %1783 = vrsqrt.f32 %v1194_v63  ;;  %v1195_v25 = vmax.f32 %v1171_v2, 1e-24 }
 0x3ee   : > { %1239 = vst [vmem:[%s2535_s14 + $0x18] sm:$0xff] %v1223_v0 }
 0x3ef   : > { %v1780_v4 = vpop.eup %1779  ;;  %1785 = vrsqrt.f32 %v1195_v25 }
 0x3f0   : > { %v1224_v5 = vmul.f32 %v1780_v4, %v2435_v45 }
 0x3f1   : > { %v1782_v6 = vpop.eup %1781 }
 0x3f2   : > { %1240 = vst [vmem:[%s2535_s14 + $0x20] sm:$0xff] %v1224_v5  ;;  %v1225_v36 = vmul.f32 %v1782_v6, %v2438_v47  ;;  %v1173_v7 = vpop.xlane.xlu0 %1172 }
 0x3f3   : > { %v1196_v8 = vmax.f32 %v1173_v7, 1e-24 }
 0x3f4   : > { %1241 = vst [vmem:[%s2535_s14 + $0x28] sm:$0xff] %v1225_v36  ;;  %v1175_v9 = vpop.xlane.xlu1 %1174 }
 0x3f5   : > { %1787 = vrsqrt.f32 %v1196_v8  ;;  %v1197_v37 = vmax.f32 %v1175_v9, 1e-24 }
 0x3f7   : > { %v1784_v10 = vpop.eup %1783  ;;  %1789 = vrsqrt.f32 %v1197_v37 }
 0x3f8   : > { %v1226_v12 = vmul.f32 %v1784_v10, %v2445_v55 }
 0x3f9   : > { %v1786_v14 = vpop.eup %1785 }
 0x3fa   : > { %1242 = vst [vmem:[%s2535_s14 + $0x30] sm:$0xff] %v1226_v12  ;;  %v1227_v45 = vmul.f32 %v1786_v14, %v2448_v57  ;;  %v1177_v15 = vpop.xlane.xlu0 %1176 }
 0x3fb   : > { %v1198_v16 = vmax.f32 %v1177_v15, 1e-24 }
 0x3fc   : > { %1243 = vst [vmem:[%s2535_s14 + $0x38] sm:$0xff] %v1227_v45  ;;  %v1179_v47 = vpop.xlane.xlu1 %1178 }
 0x3fd   : > { %1791 = vrsqrt.f32 %v1198_v16  ;;  %v1199_v17 = vmax.f32 %v1179_v47, 1e-24 }
 0x3ff   : > { %v1788_v18 = vpop.eup %1787  ;;  %1793 = vrsqrt.f32 %v1199_v17 }
 0x400   : > { %v1228_v19 = vmul.f32 %v1788_v18, %v2455_v1 }
 0x401   : > { %v1790_v20 = vpop.eup %1789 }
 0x402   : > { %1244 = vst [vmem:[%s2535_s14 + $0x40] sm:$0xff] %v1228_v19  ;;  %v1229_v55 = vmul.f32 %v1790_v20, %v2458_v3  ;;  %v1181_v22 = vpop.xlane.xlu0 %1180 }
 0x403   : > { %v1200_v24 = vmax.f32 %v1181_v22, 1e-24 }
 0x404   : > { %1245 = vst [vmem:[%s2535_s14 + $0x48] sm:$0xff] %v1229_v55  ;;  %v1183_v57 = vpop.xlane.xlu1 %1182 }
 0x405   : > { %1795 = vrsqrt.f32 %v1200_v24  ;;  %v1201_v26 = vmax.f32 %v1183_v57, 1e-24 }
 0x407   : > { %v1792_v27 = vpop.eup %1791  ;;  %1797 = vrsqrt.f32 %v1201_v26 }
 0x408   : > { %v1230_v28 = vmul.f32 %v1792_v27, %v2465_v11 }
 0x409   : > { %v1794_v29 = vpop.eup %1793 }
 0x40a   : > { %1246 = vst [vmem:[%s2535_s14 + $0x50] sm:$0xff] %v1230_v28  ;;  %v1231_v1 = vmul.f32 %v1794_v29, %v2468_v13  ;;  %v1185_v30 = vpop.xlane.xlu0 %1184 }
 0x40b   : > { %v1202_v33 = vmax.f32 %v1185_v30, 1e-24 }
 0x40c   : > { %1247 = vst [vmem:[%s2535_s14 + $0x58] sm:$0xff] %v1231_v1  ;;  %v1187_v3 = vpop.xlane.xlu1 %1186 }
 0x40d   : > { %1799 = vrsqrt.f32 %v1202_v33  ;;  %v1203_v35 = vmax.f32 %v1187_v3, 1e-24 }
 0x40f   : > { %v1796_v39 = vpop.eup %1795  ;;  %1801 = vrsqrt.f32 %v1203_v35 }
 0x410   : > { %v1232_v11 = vmul.f32 %v1796_v39, %v2475_v31 }
 0x411   : > { %v1798_v40 = vpop.eup %1797 }
 0x412   : > { %1248 = vst [vmem:[%s2535_s14 + $0x60] sm:$0xff] %v1232_v11  ;;  %v1233_v21 = vmul.f32 %v1798_v40, %v2478_v23 }
 0x414   : > { %1249 = vst [vmem:[%s2535_s14 + $0x68] sm:$0xff] %v1233_v21 }
 0x417   : > { %v1800_v13 = vpop.eup %1799 }
 0x418   : > { %v1234_v41 = vmul.f32 %v1800_v13, %v2485_v34 }
 0x419   : > { %v1802_v42 = vpop.eup %1801 }
 0x41a   : > { %1250 = vst [vmem:[%s2535_s14 + $0x70] sm:$0xff] %v1234_v41  ;;  %v1235_v43 = vmul.f32 %v1802_v42, %v2488_v38 }
 0x41c   : > { %1251 = vst [vmem:[%s2535_s14 + $0x78] sm:$0xff] %v1235_v43 }
 0x41d   : > { %1958 = shalt.err (!%p1955_p11)
}
 0x41e   : > { %s1959_s20 = scalar_lea.hbm %s2573_s26, 2048  ;;  %s1963_s21 = scalar_lea.hbm %s2631_s8, 4096 }
 0x41f   : > { %p1960_p8 = scmp.ne.s32.totalorder %s2573_s26, %s1959_s20  ;;  %p1964_p10 = scmp.lt.u32.totalorder %s2573_s26, %s2631_s8 }
 0x420   : > { %p1965_p3 = scmp.lt.u32.totalorder %s1963_s21, %s1959_s20  ;;  %p1967_p12 = scmp.lt.u32.totalorder %s1959_s20, %s2573_s26 }
 0x421   : > { %p1961_p13 = pnand %p1960_p8, %p2231_p5 }
 0x422   : > { %p1966_p7 = por %p1965_p3, %p1964_p10 }
 0x423   : > { %p1962_p6 = pneg %p1961_p13 }
 0x424   : > { %p1968_p1 = por %p1967_p12, %p1966_p7 }
 0x426   : > { %p1969_p2 = pnand %p1968_p1, %p1962_p6 }
 0x428   : > { %1972 = shalt.err (!%p1969_p2)
}
 0x429   : > { %1641 = dma.vmem_to_hbm [thread:$0]  (%p2231_p5), %s2575_s11, 2048, %s2573_s26, %s1258_s17, %s2035_s10, %s2035_s10, %s2036_s13  }
 0x42a PF: > { %s2661_s22 = sld [smem:[#allocation18_spill]]  ;;  %s2662_s23 = sld [smem:[#allocation19_spill]] }
 0x42b   : > { %p2664_p9 = scmp.ge.s32.totalorder %s2023_s30, 2 }
 0x430   : > { %s1302_s18 = sand.u32 1, %s2661_s22   ;;  %p2663_p4 = scmp.ne.s32.totalorder %s2662_s23, 0 }
 0x431   : > { %s1303_s1 = scalar_lea.sflag [#allocation4], %s1302_s18 }
 0x432   : > { %p1659_p0 = pnand %p2664_p9, %p2663_p4 }
 0x434   : > { %2002 = dma.done.wait (!%p1659_p0), %s1303_s1, 2048  }
 0x435   : > { %2004 = vsyncadd (!%p1659_p0), %s1303_s1, 4294965248  ;;  %s1312_s12 = scalar_lea.sflag [#allocation12], %s1302_s18 }
 0x436   : > { %2006 = dma.done.wait (!%p1659_p0), %s1312_s12, 2048  }
 0x437   : > { %2008 = vsyncadd (!%p1659_p0), %s1312_s12, 4294965248  ;;  %p27_p5 = scmp.ge.s32.totalorder %s2196_s25, 4   ;;  %s2665_s27 = smov %s2015_s28 }
 0x438   : > { %s2666_s28 = smov %s2019_s29  ;;  %s2667_s29 = smov %s2227_s19 }
 0x439   : > { %s2668_s30 = smov %s2196_s25  ;;  %29 = sbr.rel (!%p27_p5) target bundleno = 11 (0xb), region = 122 }
 0x440   :  { %1317 = vsyncpa [#allocation3], 1 }
 0x441   :  { %1319 = vsyncpa [#allocation3 + $0x1], 1 }
 0x442   :  { %1320 = vsyncpa [#allocation6], 1 }
 0x443   :  { %1321 = vsyncpa [#allocation9], 1 }
 0x444   :  { %1322 = vsyncpa [#allocation4], 1 }
 0x445   :  { %1324 = vsyncpa [#allocation4 + $0x1], 1 }
 0x446   :  { %1325 = vsyncpa [#allocation12], 1 }
 0x447   :  { %1327 = vsyncpa [#allocation12 + $0x1], 1 }

</bundles_post_ra>
